<compile_context>
chip_gen: v6e
topology: v6e:2x2x1
jax: 0.10.0
libtpu: 0.0.40
codegen_flags: <defaults>
</compile_context>

<pallas_src>
import math
import jax
import jax.numpy as jnp
from jax.experimental import pallas as pl
from jax.experimental.pallas import tpu as pltpu


def _cdiv(a, b):
    return -(-a // b)


def _round_up(x, m):
    return _cdiv(x, m) * m


def _default_group_size():
    """Lane-packing group G: hidden width becomes 32*G lanes.
    G=4 -> 128 lanes (v5e MXU width); G=8 -> 256 lanes (v6e/v7x MXU width)."""
    try:
        kind = jax.devices()[0].device_kind.lower()
    except Exception:
        return 4
    return 8 if ("v6" in kind or "v7" in kind) else 4


def mlp_kernel(x_ref, w1_ref, b1_ref, w2_ref, b2_ref, w3_ref, b3_ref, o_ref):
    # x arrives in its native f32; cast to bf16 in-kernel (VPU pass hidden under
    # the MXU) instead of a wrapper-side astype (which costs an extra HBM pass).
    xb = x_ref[...].astype(jnp.bfloat16)
    # fc1: matmul (f32 accumulate) + bias + ReLU + bf16 downcast, fused so the
    # intermediate is materialized exactly once.
    h1 = jnp.dot(xb, w1_ref[...], preferred_element_type=jnp.float32)
    h1 = jnp.maximum(h1 + b1_ref[...], 0.0).astype(jnp.bfloat16)
    # fc2
    h2 = jnp.dot(h1, w2_ref[...], preferred_element_type=jnp.float32)
    h2 = jnp.maximum(h2 + b2_ref[...], 0.0).astype(jnp.bfloat16)
    # fc3 (no activation); f32 output to match the PyTorch model dtype.
    out = jnp.dot(h2, w3_ref[...], preferred_element_type=jnp.float32)
    o_ref[...] = (out + b3_ref[...]).astype(o_ref.dtype)


def mlp_forward(x, params, *, group=None, tile_r=None):
    """x: (B, input_size) f32; params: dict of (in,out) weights and (1,out) biases."""
    w1, b1, w2, b2, w3, b3 = (params["w1"], params["b1"], params["w2"],
                              params["b2"], params["w3"], params["b3"])
    B, in_size = x.shape
    hid = w1.shape[1]
    out_size = w3.shape[1]

    g = _default_group_size() if group is None else int(group)

    # --- Lane-pack G logical batch rows per packed row via block-diag weights ---
    eye = jnp.eye(g, dtype=jnp.float32)
    w1_bd = jnp.kron(eye, w1).astype(jnp.bfloat16)     # (in*g,  hid*g)
    w2_bd = jnp.kron(eye, w2).astype(jnp.bfloat16)     # (hid*g, hid*g)
    w3_bd = jnp.kron(eye, w3).astype(jnp.bfloat16)     # (hid*g, out*g)
    b1_t = jnp.tile(b1, (1, g))                        # (1, hid*g) f32
    b2_t = jnp.tile(b2, (1, g))                        # (1, hid*g) f32
    b3_t = jnp.tile(b3, (1, g))                        # (1, out*g) f32

    R = _cdiv(B, g)                                    # packed rows needed

    if tile_r is None:
        if R <= 32:
            tile_r = _round_up(R, 16)                  # single small tile
        elif R <= 4096:
            tile_r = _round_up(_cdiv(R, 2), 16)        # >=2 steps -> both v7x TCs busy
        else:
            tile_r = 2048                              # cap keeps VMEM small everywhere
    else:
        tile_r = max(16, _round_up(int(tile_r), 16))

    r_pad = _round_up(R, tile_r)
    b_pad = r_pad * g
    if b_pad != B:
        # Single pad op in the native dtype; bf16 cast happens inside the kernel.
        x = jnp.pad(x, ((0, b_pad - B), (0, 0)))
    # Free contiguous row-major reshape: G logical rows per packed row.
    xp = x.reshape(r_pad, in_size * g)

    grid = (r_pad // tile_r,)
    resident = lambda a: pl.BlockSpec(a.shape, lambda i: (0,) * a.ndim)

    flops = 2 * b_pad * (in_size * hid + hid * hid + hid * out_size)
    bytes_accessed = (
        xp.size * 4                                    # f32 input stream
        + (w1_bd.size + w2_bd.size + w3_bd.size) * 2   # bf16 weights (resident, once)
        + (b1_t.size + b2_t.size + b3_t.size) * 4      # f32 biases (once)
        + r_pad * out_size * g * 4                     # f32 lane-packed output
    )

    out = pl.pallas_call(
        mlp_kernel,
        out_shape=jax.ShapeDtypeStruct((r_pad, out_size * g), jnp.float32),
        grid=grid,
        in_specs=[
            pl.BlockSpec((tile_r, in_size * g), lambda i: (i, 0)),   # x: streamed
            resident(w1_bd), resident(b1_t),
            resident(w2_bd), resident(b2_t),
            resident(w3_bd), resident(b3_t),
        ],
        out_specs=pl.BlockSpec((tile_r, out_size * g), lambda i: (i, 0)),
        compiler_params=pltpu.CompilerParams(
            dimension_semantics=("parallel",)),
        cost_estimate=pl.CostEstimate(
            flops=flops, transcendentals=0, bytes_accessed=bytes_accessed),
    )(xp, w1_bd, b1_t, w2_bd, b2_t, w3_bd, b3_t)

    out = out.reshape(b_pad, out_size)                 # free reshape back
    return out[:B] if b_pad != B else out


def init_params(key, input_size, output_size):
    """Deterministic init mimicking PyTorch Linear default U[-1/sqrt(fan_in), +...]."""
    def linear(key, fan_in, fan_out):
        kw, kb = jax.random.split(key)
        bound = 1.0 / math.sqrt(fan_in)
        # PyTorch stores weight as (out, in); we keep the transposed (in, out).
        w = jax.random.uniform(kw, (fan_in, fan_out), jnp.float32, -bound, bound)
        b = jax.random.uniform(kb, (1, fan_out), jnp.float32, -bound, bound)
        return w, b

    k1, k2, k3 = jax.random.split(key, 3)
    w1, b1 = linear(k1, input_size, 32)
    w2, b2 = linear(k2, 32, 32)
    w3, b3 = linear(k3, 32, output_size)
    return {"w1": w1, "b1": b1, "w2": w2, "b2": b2, "w3": w3, "b3": b3}


def mlp_reference(x, p):
    """Pure-f32 JAX reference matching the PyTorch model semantics exactly."""
    h1 = jnp.maximum(jnp.dot(x, p["w1"]) + p["b1"], 0.0)
    h2 = jnp.maximum(jnp.dot(h1, p["w2"]) + p["b2"], 0.0)
    return jnp.dot(h2, p["w3"]) + p["b3"]


if __name__ == "__main__":
    key = jax.random.PRNGKey(0)
    kx, kp, kx2 = jax.random.split(key, 3)

    input_size, output_size = 16, 4
    params = init_params(kp, input_size, output_size)

    # Small smoke test (default group / tile selection, single grid step).
    x = jax.random.normal(kx, (8, input_size), jnp.float32)
    out = jax.block_until_ready(mlp_forward(x, params))
    ref = mlp_reference(x, params)
    assert out.shape == (8, output_size)
    assert jnp.allclose(out, ref, atol=5e-2, rtol=5e-2), "mismatch vs f32 reference"

    # Ragged batch, explicit lane-pack group and small tile -> multi-step grid
    # plus the padding/slice path.
    x2 = jax.random.normal(kx2, (200, input_size), jnp.float32)
    out2 = jax.block_until_ready(mlp_forward(x2, params, group=4, tile_r=16))
    ref2 = mlp_reference(x2, params)
    assert out2.shape == (200, output_size)
    assert jnp.allclose(out2, ref2, atol=5e-2, rtol=5e-2), "mismatch (tiled path)"

    print("KERNEL_OK")
</pallas_src>

<mosaic_0001>
module attributes {stable_mosaic.version = 11 : i64} {
  func.func @mlp_kernel(%arg0: i32, %arg1: memref<16x64xf32, #tpu.memory_space<vmem>>, %arg2: memref<64x128xbf16, #tpu.memory_space<vmem>>, %arg3: memref<1x128xf32, #tpu.memory_space<vmem>>, %arg4: memref<128x128xbf16, #tpu.memory_space<vmem>>, %arg5: memref<1x128xf32, #tpu.memory_space<vmem>>, %arg6: memref<128x16xbf16, #tpu.memory_space<vmem>>, %arg7: memref<1x16xf32, #tpu.memory_space<vmem>>, %arg8: memref<16x16xf32, #tpu.memory_space<vmem>>) attributes {dimension_semantics = [#tpu.dimension_semantics<parallel>], iteration_bounds = array<i64: 1>, scalar_prefetch = 0 : i64, scratch_operands = 0 : i64, tpu.core_type = #tpu.core_type<tc>, window_params = [{transform_indices = @transform_0, window_bounds = array<i64: 16, 64>}, {pipeline_mode = #tpu.pipeline_mode<synchronous>, transform_indices = @transform_1, window_bounds = array<i64: 64, 128>}, {pipeline_mode = #tpu.pipeline_mode<synchronous>, transform_indices = @transform_2, window_bounds = array<i64: 1, 128>}, {pipeline_mode = #tpu.pipeline_mode<synchronous>, transform_indices = @transform_3, window_bounds = array<i64: 128, 128>}, {pipeline_mode = #tpu.pipeline_mode<synchronous>, transform_indices = @transform_4, window_bounds = array<i64: 1, 128>}, {pipeline_mode = #tpu.pipeline_mode<synchronous>, transform_indices = @transform_5, window_bounds = array<i64: 128, 16>}, {pipeline_mode = #tpu.pipeline_mode<synchronous>, transform_indices = @transform_6, window_bounds = array<i64: 1, 16>}, {transform_indices = @transform_7, window_bounds = array<i64: 16, 16>}]} {
    %c0 = arith.constant 0 : index
    %c0_0 = arith.constant 0 : index
    %0 = vector.load %arg1[%c0, %c0_0] : memref<16x64xf32, #tpu.memory_space<vmem>>, vector<16x64xf32>
    %1 = arith.truncf %0 : vector<16x64xf32> to vector<16x64xbf16>
    %c0_1 = arith.constant 0 : index
    %c0_2 = arith.constant 0 : index
    %2 = vector.load %arg2[%c0_1, %c0_2] : memref<64x128xbf16, #tpu.memory_space<vmem>>, vector<64x128xbf16>
    %cst = arith.constant dense<0.000000e+00> : vector<16x128xf32>
    %3 = tpu.matmul %1, %2, %cst {dimension_numbers = #tpu.dot_dimension_numbers<[1], [0], [0], [1], [0, 0, 1, 1], [], []>} : vector<16x64xbf16>, vector<64x128xbf16>, vector<16x128xf32> -> vector<16x128xf32>
    %c0_3 = arith.constant 0 : index
    %c0_4 = arith.constant 0 : index
    %4 = vector.load %arg3[%c0_3, %c0_4] : memref<1x128xf32, #tpu.memory_space<vmem>>, vector<1x128xf32>
    %5 = vector.broadcast %4 : vector<1x128xf32> to vector<16x128xf32>
    %6 = arith.addf %3, %5 : vector<16x128xf32>
    %cst_5 = arith.constant 0.000000e+00 : f32
    %7 = vector.broadcast %cst_5 : f32 to vector<16x128xf32>
    %8 = arith.maximumf %6, %7 : vector<16x128xf32>
    %9 = arith.truncf %8 : vector<16x128xf32> to vector<16x128xbf16>
    %c0_6 = arith.constant 0 : index
    %c0_7 = arith.constant 0 : index
    %10 = vector.load %arg4[%c0_6, %c0_7] : memref<128x128xbf16, #tpu.memory_space<vmem>>, vector<128x128xbf16>
    %cst_8 = arith.constant dense<0.000000e+00> : vector<16x128xf32>
    %11 = tpu.matmul %9, %10, %cst_8 {dimension_numbers = #tpu.dot_dimension_numbers<[1], [0], [0], [1], [0, 0, 1, 1], [], []>} : vector<16x128xbf16>, vector<128x128xbf16>, vector<16x128xf32> -> vector<16x128xf32>
    %c0_9 = arith.constant 0 : index
    %c0_10 = arith.constant 0 : index
    %12 = vector.load %arg5[%c0_9, %c0_10] : memref<1x128xf32, #tpu.memory_space<vmem>>, vector<1x128xf32>
    %13 = vector.broadcast %12 : vector<1x128xf32> to vector<16x128xf32>
    %14 = arith.addf %11, %13 : vector<16x128xf32>
    %cst_11 = arith.constant 0.000000e+00 : f32
    %15 = vector.broadcast %cst_11 : f32 to vector<16x128xf32>
    %16 = arith.maximumf %14, %15 : vector<16x128xf32>
    %17 = arith.truncf %16 : vector<16x128xf32> to vector<16x128xbf16>
    %c0_12 = arith.constant 0 : index
    %c0_13 = arith.constant 0 : index
    %18 = vector.load %arg6[%c0_12, %c0_13] : memref<128x16xbf16, #tpu.memory_space<vmem>>, vector<128x16xbf16>
    %cst_14 = arith.constant dense<0.000000e+00> : vector<16x16xf32>
    %19 = tpu.matmul %17, %18, %cst_14 {dimension_numbers = #tpu.dot_dimension_numbers<[1], [0], [0], [1], [0, 0, 1, 1], [], []>} : vector<16x128xbf16>, vector<128x16xbf16>, vector<16x16xf32> -> vector<16x16xf32>
    %c0_15 = arith.constant 0 : index
    %c0_16 = arith.constant 0 : index
    %20 = vector.load %arg7[%c0_15, %c0_16] : memref<1x16xf32, #tpu.memory_space<vmem>>, vector<1x16xf32>
    %21 = vector.broadcast %20 : vector<1x16xf32> to vector<16x16xf32>
    %22 = arith.addf %19, %21 : vector<16x16xf32>
    %c0_17 = arith.constant 0 : index
    %c0_18 = arith.constant 0 : index
    %23 = vector.load %arg8[%c0_17, %c0_18] : memref<16x16xf32, #tpu.memory_space<vmem>>, vector<16x16xf32>
    tpu.vector_store %arg8[%c0_17, %c0_18], %22 {strides = array<i32>} : memref<16x16xf32, #tpu.memory_space<vmem>>, vector<16x16xf32>,
    return
  }
  func.func @transform_0(%arg0: i32) -> (i32, i32) {
    %c0_i32 = arith.constant 0 : i32
    %c0_i32_0 = arith.constant 0 : i32
    return %arg0, %c0_i32 : i32, i32
  }
  func.func @transform_1(%arg0: i32) -> (i32, i32) {
    %c0_i32 = arith.constant 0 : i32
    %c0_i32_0 = arith.constant 0 : i32
    %c0_i32_1 = arith.constant 0 : i32
    return %c0_i32, %c0_i32_0 : i32, i32
  }
  func.func @transform_2(%arg0: i32) -> (i32, i32) {
    %c0_i32 = arith.constant 0 : i32
    %c0_i32_0 = arith.constant 0 : i32
    %c0_i32_1 = arith.constant 0 : i32
    return %c0_i32, %c0_i32_0 : i32, i32
  }
  func.func @transform_3(%arg0: i32) -> (i32, i32) {
    %c0_i32 = arith.constant 0 : i32
    %c0_i32_0 = arith.constant 0 : i32
    %c0_i32_1 = arith.constant 0 : i32
    return %c0_i32, %c0_i32_0 : i32, i32
  }
  func.func @transform_4(%arg0: i32) -> (i32, i32) {
    %c0_i32 = arith.constant 0 : i32
    %c0_i32_0 = arith.constant 0 : i32
    %c0_i32_1 = arith.constant 0 : i32
    return %c0_i32, %c0_i32_0 : i32, i32
  }
  func.func @transform_5(%arg0: i32) -> (i32, i32) {
    %c0_i32 = arith.constant 0 : i32
    %c0_i32_0 = arith.constant 0 : i32
    %c0_i32_1 = arith.constant 0 : i32
    return %c0_i32, %c0_i32_0 : i32, i32
  }
  func.func @transform_6(%arg0: i32) -> (i32, i32) {
    %c0_i32 = arith.constant 0 : i32
    %c0_i32_0 = arith.constant 0 : i32
    %c0_i32_1 = arith.constant 0 : i32
    return %c0_i32, %c0_i32_0 : i32, i32
  }
  func.func @transform_7(%arg0: i32) -> (i32, i32) {
    %c0_i32 = arith.constant 0 : i32
    %c0_i32_0 = arith.constant 0 : i32
    return %arg0, %c0_i32 : i32, i32
  }
}

</mosaic_0001>

<bundles_post_ra>
// kernel: tpu_custom_call.1
= control target key start
LH: loop header
LB: loop body
LE: loop exit
PB: predicated region body
PF: predicated region fallthrough
CT: control target
= control target key end

     0   :  { %12 = vsyncpa [#allocation3], 0  ;;  %s735_s0 = inlined_call_operand.hbm [shape: f32[16,64], index: 0, kind: input, shape index: {}]   ;;  %s736_s1 = inlined_call_operand.hbm [shape: bf16[64,128], index: 1, kind: input, shape index: {}]   ;;  %s737_s2 = inlined_call_operand.vmem [shape: f32[1,128], index: 2, kind: input, shape index: {}]   ;;  %s738_s3 = inlined_call_operand.vmem [shape: bf16[128,128], index: 3, kind: input, shape index: {}]   ;;  %s739_s4 = inlined_call_operand.vmem [shape: f32[1,128], index: 4, kind: input, shape index: {}]   ;;  %s740_s5 = inlined_call_operand.vmem [shape: bf16[128,16], index: 5, kind: input, shape index: {}]   ;;  %s741_s6 = inlined_call_operand.vmem [shape: f32[1,16], index: 6, kind: input, shape index: {}]   ;;  %s742_s7 = inlined_call_operand.hbm [shape: f32[16,16], index: 7, kind: output, shape index: {}]  }
   0x1   :  { %13 = vsyncpa [#allocation6], 0 }
   0x2   :  { %14 = vsyncpa [#allocation4], 0  ;;  %s588_s24 = smov [#allocation2]  }
   0x3   :  { %s20_s25 = sshll.u32 %s588_s24, 4  ;;  %s21_s25 = int_to_ptr.vmem [resolvable:$true] %s20_s25 }
   0x4   :  { %s530_s26 = scalar_lea.vmem %s21_s25, 256  ;;  %p535_p1 = scmp.lt.s32.totalorder %s21_s25, %s21_s25 }
   0x5   :  { %p531_p0 = scmp.ne.s32.totalorder %s21_s25, %s530_s26  ;;  %p536_p2 = scmp.lt.s32.totalorder %s530_s26, %s530_s26 }
   0x7   :  { %p537_p3 = por %p536_p2, %p535_p1 }
   0x9   :  { %p538_p4 = pnand %p537_p3, %p531_p0 }
   0xb   :  { %541 = shalt.err (!%p538_p4)
}
   0xc   :  { %s589_s27 = smov 128   ;;  %s590_s28 = smov 8  }
   0xd   :  { %26 = dma.hbm_to_vmem [thread:$0]  %s735_s0, 256, %s21_s25, [#allocation3], %s589_s27, %s589_s27, %s590_s28  }
   0xe   :  { %s591_s8 = smov [#allocation5]  }
   0xf   :  { %s32_s9 = sshll.u32 %s591_s8, 4  ;;  %s33_s9 = int_to_ptr.vmem [resolvable:$true] %s32_s9 }
  0x10   :  { %s550_s10 = scalar_lea.vmem %s33_s9, 512  ;;  %p555_p6 = scmp.lt.s32.totalorder %s33_s9, %s33_s9 }
  0x11   :  { %p551_p5 = scmp.ne.s32.totalorder %s33_s9, %s550_s10  ;;  %p556_p7 = scmp.lt.s32.totalorder %s550_s10, %s550_s10 }
  0x13   :  { %p557_p8 = por %p556_p7, %p555_p6 }
  0x15   :  { %p558_p9 = pnand %p557_p8, %p551_p5 }
  0x17   :  { %561 = shalt.err (!%p558_p9)
}
  0x18   :  { %s592_s11 = smov 64   ;;  %s593_s12 = smov 4  }
  0x19   :  { %38 = dma.hbm_to_vmem [thread:$0]  %s736_s1, 512, %s33_s9, [#allocation6], %s592_s11, %s592_s11, %s593_s12  }
  0x1a   :  { %582 = dma.done.wait [#allocation3], 256  }
  0x1b   :  { %583 = vsyncadd [#allocation3], 4294967040 }
  0x1c   :  { %584 = dma.done.wait [#allocation6], 512  }
  0x1d   :  { %585 = vsyncadd [#allocation6], 4294966784  ;;  %v594_v0 = vmov 0.0   ;;  %vm595_vm0 = vmmov 0   ;;  %v502_v1 = vld [vmem:[#allocation5 + $0x18] sm:$0xff]   ;;  %v503_v2 = vld [vmem:[#allocation5 + $0x10] sm:$0xff]  }
  0x1e   :  { %441 = vmatprep.subr.bf16.mxu0 %v594_v0  ;;  %449 = vmatprep.mubr.msk.bf16.mxu0 %vm595_vm0, %v594_v0  ;;  %v506_v3 = vld [vmem:[%s738_s3 + $0x38] sm:$0xff]   ;;  %v507_v5 = vld [vmem:[%s738_s3 + $0x30] sm:$0xff]   ;;  %v56_v7 = vld [vmem:[#allocation2] sm:$0xff]  ;;  %vm98_vm1 = vcmask 523264   ;;  %vm373_vm2 = vcmask 130048  }
  0x1f   :  { %453 = vmatprep.subr.bf16.mxu1 %v594_v0  ;;  %469 = vmatprep.mubr.msk.bf16.mxu1 %vm595_vm0, %v594_v0  ;;  %v504_v4 = vld [vmem:[#allocation5 + $0x8] sm:$0xff]   ;;  %v505_v6 = vld [vmem:[#allocation5] sm:$0xff]   ;;  %v57_v8 = vld [vmem:[#allocation2 + $0x8] sm:$0xff] }
  0x20   :  { %442 = vmatpush3.bf16.msra.mxu0 %v502_v1  ;;  %454 = vmatpush3.bf16.msra.mxu1 %v506_v3  ;;  %v508_v9 = vld [vmem:[%s738_s3 + $0x28] sm:$0xff]   ;;  %v58_v10 = vpack.c.bf16 %v57_v8, %v56_v7  ;;  %v509_v11 = vld [vmem:[%s738_s3 + $0x20] sm:$0xff]   ;;  %v510_v12 = vld [vmem:[%s738_s3 + $0x18] sm:$0xff]  }
  0x21   :  { %443 = vmatprep.subr.bf16.mxu0 %v594_v0  ;;  %455 = vmatprep.subr.bf16.mxu1 %v594_v0  ;;  %v511_v13 = vld [vmem:[%s738_s3 + $0x10] sm:$0xff]   ;;  %v512_v14 = vld [vmem:[%s738_s3 + $0x8] sm:$0xff]   ;;  %v513_v15 = vld [vmem:[%s738_s3] sm:$0xff]  }
  0x22   :  { %v514_v16 = vld [vmem:[%s740_s5 + $0x38] sm:$0xff]   ;;  %v515_v17 = vld [vmem:[%s740_s5 + $0x30] sm:$0xff]   ;;  %v516_v18 = vld [vmem:[%s740_s5 + $0x28] sm:$0xff]  }
  0x23   :  { %v517_v19 = vld [vmem:[%s740_s5 + $0x20] sm:$0xff]   ;;  %v518_v20 = vld [vmem:[%s740_s5 + $0x18] sm:$0xff]   ;;  %v519_v31 = vld [vmem:[%s740_s5 + $0x10] sm:$0xff]  }
  0x24   :  { %444 = vmatpush3.bf16.msra.mxu0 %v503_v2  ;;  %456 = vmatpush3.bf16.msra.mxu1 %v507_v5  ;;  %v394_v21 = vld [vmem:[%s737_s2] ss:$0 sm:$0xff]  ;;  %v520_v32 = vld [vmem:[%s740_s5 + $0x8] sm:$0xff]  }
  0x25   :  { %445 = vmatprep.subr.bf16.mxu0 %v594_v0  ;;  %457 = vmatprep.subr.bf16.mxu1 %v594_v0  ;;  %v521_v33 = vld [vmem:[%s740_s5] sm:$0xff]   ;;  %s596_s5 = smov [#allocation7]  }
  0x26   :  { %v400_v34 = vld [vmem:[%s739_s4] ss:$0 sm:$0xff]  ;;  %s381_s4 = sshll.u32 %s596_s5, 4  ;;  %s382_s4 = int_to_ptr.vmem [resolvable:$true] %s381_s4 }
  0x27   :  { %v409_v44 = vld [vmem:[%s741_s6] ss:$0 sm:$0xff]  ;;  %s562_s26 = scalar_lea.vmem %s382_s4, 256  ;;  %p567_p11 = scmp.lt.s32.totalorder %s382_s4, %s382_s4 }
  0x28   :  { %446 = vmatpush3.bf16.msra.mxu0 %v504_v4  ;;  %458 = vmatpush3.bf16.msra.mxu1 %v508_v9  ;;  %p563_p10 = scmp.ne.s32.totalorder %s382_s4, %s562_s26  ;;  %p568_p12 = scmp.lt.s32.totalorder %s562_s26, %s562_s26 }
  0x29   :  { %447 = vmatprep.subr.bf16.mxu0 %v594_v0  ;;  %459 = vmatprep.subr.bf16.mxu1 %v594_v0 }
  0x2a   :  { %p569_p13 = por %p568_p12, %p567_p11 }
  0x2c   :  { %448 = vmatpush3.bf16.msra.mxu0 %v505_v6  ;;  %460 = vmatpush3.bf16.msra.mxu1 %v509_v11  ;;  %p570_p0 = pnand %p569_p13, %p563_p10 }
  0x2d   :  { %473 = vmatprep.subr.bf16.mxu0 %v594_v0  ;;  %461 = vmatprep.subr.bf16.mxu1 %v594_v0 }
  0x2f   :  { %450 = vmatmul.mubr.msk.bf16.vlgmr.msra.gmra.mxu0 %vm98_vm1, %v58_v10 }
  0x30   :  { %489 = vmatprep.mubr.msk.bf16.mxu0 %vm595_vm0, %v594_v0  ;;  %462 = vmatpush3.bf16.msra.mxu1 %v510_v12 }
  0x31   :  { %463 = vmatprep.subr.bf16.mxu1 %v594_v0  ;;  %474 = vmatpush3.bf16.msra.mxu0 %v514_v16 }
  0x32   :  { %475 = vmatprep.subr.bf16.mxu0 %v594_v0 }
  0x34   :  { %464 = vmatpush3.bf16.msra.mxu1 %v511_v13 }
  0x35   :  { %465 = vmatprep.subr.bf16.mxu1 %v594_v0  ;;  %476 = vmatpush3.bf16.msra.mxu0 %v515_v17 }
  0x36   :  { %477 = vmatprep.subr.bf16.mxu0 %v594_v0 }
  0x38   :  { %466 = vmatpush3.bf16.msra.mxu1 %v512_v14 }
  0x39   :  { %467 = vmatprep.subr.bf16.mxu1 %v594_v0  ;;  %478 = vmatpush3.bf16.msra.mxu0 %v516_v18 }
  0x3a   :  { %479 = vmatprep.subr.bf16.mxu0 %v594_v0 }
  0x3c   :  { %468 = vmatpush3.bf16.msra.mxu1 %v513_v15 }
  0x3d   :  { %480 = vmatpush3.bf16.msra.mxu0 %v517_v19 }
  0x3e   :  { %481 = vmatprep.subr.bf16.mxu0 %v594_v0 }
  0x41   :  { %482 = vmatpush3.bf16.msra.mxu0 %v518_v20 }
  0x42   :  { %483 = vmatprep.subr.bf16.mxu0 %v594_v0 }
  0x45   :  { %484 = vmatpush3.bf16.msra.mxu0 %v519_v31 }
  0x46   :  { %485 = vmatprep.subr.bf16.mxu0 %v594_v0 }
  0x49   :  { %486 = vmatpush3.bf16.msra.mxu0 %v520_v32 }
  0x4a   :  { %487 = vmatprep.subr.bf16.mxu0 %v594_v0 }
  0x4d   :  { %488 = vmatpush3.bf16.msra.mxu0 %v521_v33 }
  0xef   :  { %v136_v22 = vpop.f32.mrf.mxu0 }
  0xf0   :  { %v137_v24 = vadd.f32 %v394_v21, %v136_v22 }
  0xf1   :  { %v451_v23 = vpop.f32.mrf.mxu0 }
  0xf2   :  { %v143_v28 = vmax.f32 %v137_v24, 0.0 }
  0xf3   :  { %v139_v25 = vpop.f32.mrf.mxu0 }
  0xf4   :  { %v140_v26 = vadd.f32 %v394_v21, %v139_v25 }
  0xf5   :  { %v452_v27 = vpop.f32.mrf.mxu0 }
  0xf6   :  { %v144_v29 = vmax.f32 %v140_v26, 0.0 }
  0xf8   :  { %v145_v30 = vpack.c.bf16 %v144_v29, %v143_v28 }
  0xfa   :  { %470 = vmatmul.mubr.bf16.vlgmr.msra.gmra.mxu1 %v145_v30 }
 0x1ba   :  { %v251_v35 = vpop.f32.mrf.mxu1 }
 0x1bb   :  { %v252_v37 = vadd.f32 %v400_v34, %v251_v35 }
 0x1bc   :  { %v471_v36 = vpop.f32.mrf.mxu1 }
 0x1bd   :  { %v258_v41 = vmax.f32 %v252_v37, 0.0 }
 0x1be   :  { %v254_v38 = vpop.f32.mrf.mxu1 }
 0x1bf   :  { %v255_v39 = vadd.f32 %v400_v34, %v254_v38 }
 0x1c0   :  { %v472_v40 = vpop.f32.mrf.mxu1 }
 0x1c1   :  { %v259_v42 = vmax.f32 %v255_v39, 0.0 }
 0x1c3   :  { %v260_v43 = vpack.c.bf16 %v259_v42, %v258_v41 }
 0x1c5   :  { %490 = vmatmul.mubr.bf16.vlgmr.msra.gmra.mxu0 %v260_v43 }
 0x285   :  { %v366_v45 = vpop.f32.mrf.mxu0 }
 0x286   :  { %v367_v46 = vadd.f32 %v409_v44, %v366_v45 }
 0x287   :  { %v491_v47 = vpop.f32.mrf.mxu0 }
 0x288   :  { %374 = vst.msk [vmem:[#allocation7] sm:$0xff] %vm373_vm2, %v367_v46 }
 0x289   :  { %v369_v48 = vpop.f32.mrf.mxu0 }
 0x28a   :  { %v370_v49 = vadd.f32 %v409_v44, %v369_v48 }
 0x28b   :  { %v492_v50 = vpop.f32.mrf.mxu0 }
 0x28c   :  { %375 = vst.msk [vmem:[#allocation7 + $0x8] sm:$0xff] %vm373_vm2, %v370_v49 }
 0x28d   :  { %573 = shalt.err (!%p570_p0)
}
 0x28e   :  { %387 = dma.vmem_to_hbm [thread:$0]  %s382_s4, 256, %s742_s7, [#allocation4], %s589_s27, %s589_s27, %s590_s28  }
 0x28f   :  { %586 = dma.done.wait [#allocation4], 256  }
 0x290   :  { %587 = vsyncadd [#allocation4], 4294967040 }
 0x291   :  { %391 = vsyncpa [#allocation3], 1 }
 0x292   :  { %392 = vsyncpa [#allocation6], 1 }
 0x293   :  { %393 = vsyncpa [#allocation4], 1 }

</bundles_post_ra>
